<compile_context>
chip_gen: v5e
topology: v5e:2x2
jax: 0.10.0
libtpu: 0.0.40
codegen_flags: <defaults>
</compile_context>

<pallas_src>
import math
import functools

import jax
import jax.numpy as jnp
from jax.experimental import pallas as pl
from jax.experimental.pallas import tpu as pltpu

MAX_LEN = 42


def _build_pe(d_model: int, max_len: int = MAX_LEN) -> jnp.ndarray:
    """Deterministic sinusoidal positional-encoding table, shape (max_len, d_model)."""
    position = jnp.arange(max_len, dtype=jnp.float32)[:, None]              # (L, 1)
    div_term = jnp.exp(
        jnp.arange(0, d_model, 2, dtype=jnp.float32)
        * (-math.log(10000.0) / d_model)
    )                                                                        # (D/2,)
    ang = position * div_term                                                # (L, D/2)
    pe = jnp.zeros((max_len, d_model), dtype=jnp.float32)
    pe = pe.at[:, 0::2].set(jnp.sin(ang))
    pe = pe.at[:, 1::2].set(jnp.cos(ang))
    return pe


def _pe_kernel_2d(x_ref, pe_ref, o_ref, *, scale):
    # Lane-dense path: x_ref / pe_ref / o_ref are (ts, B*D) VMEM tiles.
    o_ref[...] = (x_ref[...] * scale + pe_ref[...]).astype(o_ref.dtype)


def _pe_kernel_3d(x_ref, pe_ref, o_ref, *, scale):
    # x_ref / o_ref: (ts, B, D); pe_ref: (ts, D), broadcast over batch in-kernel.
    x = x_ref[...]
    pe = pe_ref[...]
    o_ref[...] = (x * scale + pe[:, None, :]).astype(o_ref.dtype)


def _choose_ts(S: int, row_bytes: int, multiple: int, target_bytes: int = 2 << 20) -> int:
    """Pick a sequence-tile size so one tile of (x + out) is ~target_bytes.

    Keeps per-step DMA overhead (~0.35us) amortized while leaving plenty of
    headroom under the scoped-VMEM limit even with 2x double buffering on v7x.
    """
    ts = max(1, target_bytes // max(1, row_bytes))
    if ts >= S:
        return S                           # full axis — always a legal block
    ts = (ts // multiple) * multiple       # 2nd-to-last dim must be sublane-aligned
    if ts < multiple:
        ts = multiple
    return min(ts, S)


@functools.partial(jax.jit, static_argnames=("d_model",))
def positional_encoding_forward(x: jnp.ndarray, pe_full: jnp.ndarray, *, d_model: int):
    """x: (S, B, D); pe_full: (max_len, D). Returns (S, B, D)."""
    S, B, D = x.shape
    assert D == d_model
    assert S <= pe_full.shape[0], "sequence length exceeds max_len of the PE table"

    scale = math.sqrt(d_model)
    pe = pe_full[:S].astype(x.dtype)                      # (S, D), the pe[:x.size(0)] slice

    itemsize = jnp.dtype(x.dtype).itemsize
    sublane = max(8, 32 // itemsize)                      # 8 for f32, 16 for bf16
    lane_dense = (D % 128) != 0

    if lane_dense:
        # d_model < 128 (or not lane-aligned): flatten batch into the lane axis so
        # stores are full-width. Reshape of (S, B, D) -> (S, B*D) is row-major free;
        # pe tiled across B is tiny (S <= max_len = 42 rows).
        F = B * D
        x2 = x.reshape(S, F)
        pe2 = jnp.tile(pe, (1, B))                        # (S, B*D)

        row_bytes = 2 * F * itemsize                      # x row + out row
        ts = _choose_ts(S, row_bytes, sublane)
        grid = (pl.cdiv(S, ts),)

        out2 = pl.pallas_call(
            functools.partial(_pe_kernel_2d, scale=scale),
            out_shape=jax.ShapeDtypeStruct((S, F), x.dtype),
            grid=grid,
            in_specs=[
                pl.BlockSpec((ts, F), lambda si: (si, 0)),
                pl.BlockSpec((ts, F), lambda si: (si, 0)),
            ],
            out_specs=pl.BlockSpec((ts, F), lambda si: (si, 0)),
            compiler_params=pltpu.CompilerParams(
                dimension_semantics=("parallel",)
            ),
        )(x2, pe2)
        return out2.reshape(S, B, D)

    # d_model already a multiple of 128: keep (S, B, D) blocks, pe stays (ts, D)
    # so it is not re-read B times from HBM.
    row_bytes = 2 * B * D * itemsize
    ts = _choose_ts(S, row_bytes, sublane)
    grid = (pl.cdiv(S, ts),)

    return pl.pallas_call(
        functools.partial(_pe_kernel_3d, scale=scale),
        out_shape=jax.ShapeDtypeStruct((S, B, D), x.dtype),
        grid=grid,
        in_specs=[
            pl.BlockSpec((ts, B, D), lambda si: (si, 0, 0)),
            pl.BlockSpec((ts, D), lambda si: (si, 0)),
        ],
        out_specs=pl.BlockSpec((ts, B, D), lambda si: (si, 0, 0)),
        compiler_params=pltpu.CompilerParams(
            dimension_semantics=("parallel",)
        ),
    )(x, pe)


if __name__ == "__main__":
    d_model = 32
    seq_len = 8
    batch = 2

    key = jax.random.PRNGKey(0)
    x = jax.random.normal(key, (seq_len, batch, d_model), dtype=jnp.float32)

    pe_table = _build_pe(d_model, MAX_LEN)

    out = positional_encoding_forward(x, pe_table, d_model=d_model)
    out = jax.block_until_ready(out)

    # Reference check (pure JAX) to confirm semantics.
    ref = x * math.sqrt(d_model) + pe_table[:seq_len][:, None, :]
    assert out.shape == (seq_len, batch, d_model)
    assert jnp.allclose(out, ref, atol=1e-5, rtol=1e-5)

    print("KERNEL_OK")
</pallas_src>

<mosaic_0001>
module attributes {stable_mosaic.version = 11 : i64} {
  func.func @_pe_kernel_2d(%arg0: i32, %arg1: memref<8x64xf32, #tpu.memory_space<vmem>>, %arg2: memref<8x64xf32, #tpu.memory_space<vmem>>, %arg3: memref<8x64xf32, #tpu.memory_space<vmem>>) attributes {dimension_semantics = [#tpu.dimension_semantics<parallel>], iteration_bounds = array<i64: 1>, scalar_prefetch = 0 : i64, scratch_operands = 0 : i64, tpu.core_type = #tpu.core_type<tc>, window_params = [{transform_indices = @transform_0, window_bounds = array<i64: 8, 64>}, {transform_indices = @transform_1, window_bounds = array<i64: 8, 64>}, {transform_indices = @transform_2, window_bounds = array<i64: 8, 64>}]} {
    %c0 = arith.constant 0 : index
    %c0_0 = arith.constant 0 : index
    %0 = vector.load %arg1[%c0, %c0_0] : memref<8x64xf32, #tpu.memory_space<vmem>>, vector<8x64xf32>
    %cst = arith.constant 5.65685415 : f32
    %1 = vector.broadcast %cst : f32 to vector<8x64xf32>
    %2 = arith.mulf %0, %1 : vector<8x64xf32>
    %c0_1 = arith.constant 0 : index
    %c0_2 = arith.constant 0 : index
    %3 = vector.load %arg2[%c0_1, %c0_2] : memref<8x64xf32, #tpu.memory_space<vmem>>, vector<8x64xf32>
    %4 = arith.addf %2, %3 : vector<8x64xf32>
    %c0_3 = arith.constant 0 : index
    %c0_4 = arith.constant 0 : index
    %5 = vector.load %arg3[%c0_3, %c0_4] : memref<8x64xf32, #tpu.memory_space<vmem>>, vector<8x64xf32>
    tpu.vector_store %arg3[%c0_3, %c0_4], %4 {strides = array<i32>} : memref<8x64xf32, #tpu.memory_space<vmem>>, vector<8x64xf32>,
    return
  }
  func.func @transform_0(%arg0: i32) -> (i32, i32) {
    %c0_i32 = arith.constant 0 : i32
    %c0_i32_0 = arith.constant 0 : i32
    return %arg0, %c0_i32 : i32, i32
  }
  func.func @transform_1(%arg0: i32) -> (i32, i32) {
    %c0_i32 = arith.constant 0 : i32
    %c0_i32_0 = arith.constant 0 : i32
    return %arg0, %c0_i32 : i32, i32
  }
  func.func @transform_2(%arg0: i32) -> (i32, i32) {
    %c0_i32 = arith.constant 0 : i32
    %c0_i32_0 = arith.constant 0 : i32
    return %arg0, %c0_i32 : i32, i32
  }
}

</mosaic_0001>

<bundles_post_ra>
// kernel: tile.9
= control target key start
LH: loop header
LB: loop body
LE: loop exit
PB: predicated region body
PF: predicated region fallthrough
CT: control target
= control target key end

     0   :  { %vm36_vm0 = vcmask 1047556   ;;  %vm38_vm1 = vcmask 261120   ;;  %vm48_vm2 = vcmask 523520   ;;  %s99_s0 = inlined_call_operand.vmem [shape: f32[8,2,32], index: 0, kind: input, shape index: {}]   ;;  %s100_s1 = inlined_call_operand.vmem [shape: f32[8,64], index: 1, kind: output, shape index: {}]  }
   0x1   :  { %v50_v0 = vld [vmem:[%s99_s0 + $0xe] sm:$0x3]  ;;  %v51_v1 = vld [vmem:[%s99_s0 + $0xc] sm:$0x3]  ;;  %v52_v2 = vld [vmem:[%s99_s0 + $0xa] sm:$0x3] }
   0x2   :  { %7 = vst [vmem:[#allocation0 + $0x38] sm:$0x3] %v50_v0  ;;  %v53_v3 = vld [vmem:[%s99_s0 + $0x8] sm:$0x3]  ;;  %v54_v4 = vld [vmem:[%s99_s0 + $0x6] sm:$0x3] }
   0x3   :  { %11 = vst [vmem:[#allocation0 + $0x30] sm:$0x3] %v51_v1  ;;  %v55_v5 = vld [vmem:[%s99_s0 + $0x4] sm:$0x3]  ;;  %v56_v6 = vld [vmem:[%s99_s0 + $0x2] sm:$0x3] }
   0x4   :  { %15 = vst [vmem:[#allocation0 + $0x28] sm:$0x3] %v52_v2  ;;  %v32_v7 = vld [vmem:[%s99_s0] sm:$0x3]  ;;  %s58_s0 = smov 32  }
   0x5   :  { %19 = vst [vmem:[#allocation0 + $0x20] sm:$0x3] %v53_v3 }
   0x6   :  { %23 = vst [vmem:[#allocation0 + $0x18] sm:$0x3] %v54_v4 }
   0x7   :  { %27 = vst [vmem:[#allocation0 + $0x10] sm:$0x3] %v55_v5 }
   0x8   :  { %31 = vst [vmem:[#allocation0 + $0x8] sm:$0x3] %v56_v6 }
   0x9   :  { %33 = vst [vmem:[#allocation0] sm:$0x3] %v32_v7 }
   0xc   :  { %v35_v8 = vld [vmem:[#allocation0] ss:$8 sm:$0xf0]   ;;  %v43_v9 = vld [vmem:[#allocation0 + $0x1] ss:$8 sm:$0xf0]  }
  0x10   :  { %v34_v10 = vld [vmem:[#allocation0] ss:$8 sm:$0xf]   ;;  %v41_v11 = vld [vmem:[#allocation0 + $0x1] ss:$8 sm:$0xf]  }
  0x11   :  { %v37_v12 = vsel %vm36_vm0, %v35_v8, %v34_v10  ;;  %v45_v13 = vsel %vm36_vm0, %v43_v9, %v41_v11 }
  0x12   :  { %46 = vrot.lane.b32.xlu0 %v45_v13, %s58_s0  ;;  %39 = vst.msk [vmem:[%s100_s1] sm:$0xff] %vm38_vm1, %v37_v12  }
  0x84   :  { %v47_v14 = vpop.permute.xlu0 %46  }
  0x85   :  { %49 = vst.msk [vmem:[%s100_s1] sm:$0xff] %vm48_vm2, %v47_v14  }

// kernel: positional_encoding_forward.1
= control target key start
LH: loop header
LB: loop body
LE: loop exit
PB: predicated region body
PF: predicated region fallthrough
CT: control target
= control target key end

     0   :  { %vm15_vm0 = vcmask 523264   ;;  %s45_s0 = inlined_call_operand.vmem [shape: f32[8,64], index: 0, kind: input, shape index: {}]   ;;  %s46_s1 = inlined_call_operand.vmem [shape: f32[8,64], index: 1, kind: input, shape index: {}]   ;;  %s47_s2 = inlined_call_operand.vmem [shape: f32[8,64], index: 2, kind: output, shape index: {}]  }
   0x1   :  { %v11_v0 = vld [vmem:[%s45_s0] sm:$0xff] }
   0x2   :  { %v13_v1 = vld [vmem:[%s46_s1] sm:$0xff]  ;;  %v12_v2 = vmul.f32 5.656854, %v11_v0 }
   0x4   :  { %v14_v3 = vadd.f32 %v13_v1, %v12_v2 }
   0x6   :  { %16 = vst.msk [vmem:[%s47_s2] sm:$0xff] %vm15_vm0, %v14_v3 }

</bundles_post_ra>
